<compile_context>
chip_gen: v7x
topology: tpu7x:2x2x1
jax: 0.10.0
libtpu: 0.0.40
codegen_flags: <defaults>
</compile_context>

<pallas_src>
import functools

import jax
import jax.numpy as jnp
from jax import lax
from jax.experimental import pallas as pl
from jax.experimental.pallas import tpu as pltpu

INPUT_SIZE = 46
HIDDEN = 32
NUM_CLASSES = 8
F_PAD = 128    # lane-dense feature (contraction) width inside the kernel
OUT_PAD = 128  # lane-dense fc output width inside the kernel


def _gate_acts(gates, H):
    """One full-width sigmoid EUP dispatch over all 4H gate lanes.

    The g-gate pre-activation columns were pre-scaled by 2 at param-prep time,
    so tanh(z) = 2*sigmoid(2z) - 1 is recovered with a VPU multiply/subtract.
    Gate order [i, f, g, o]."""
    sig = jax.nn.sigmoid(gates)
    i = sig[:, 0 * H:1 * H]
    f = sig[:, 1 * H:2 * H]
    g = 2.0 * sig[:, 2 * H:3 * H] - 1.0
    o = sig[:, 3 * H:4 * H]
    return i, f, g, o


def bilstm_fc_kernel(x_ref, wih_f_ref, b_f_ref, whh_f_ref,
                     wih_b_ref, b_b_ref,
                     fcw_f_ref, fcw_b_ref, fcb_ref,
                     out_ref, gates_ref, *, seq_len, batch):
    """x_ref: (T*B, F_PAD) time-major flattened (row = t*B + b).
    wih_f_ref: (F_PAD, 4H), b_f_ref: (1, 4H), whh_f_ref: (H, 4H)   [forward]
    wih_b_ref: (F_PAD, 4H), b_b_ref: (1, 4H)                       [backward]
    fcw_f_ref/fcw_b_ref: (H, OUT_PAD), fcb_ref: (1, OUT_PAD)
    out_ref: (B, OUT_PAD).  gates_ref: VMEM scratch (T*B, 4H).
    All g-gate columns/biases are pre-scaled by 2 (tanh-via-sigmoid)."""
    T, B, H = seq_len, batch, HIDDEN

    # ---- hoisted forward-direction input projection for all T steps,
    # bias folded in, parked in VMEM scratch (bounds live ranges) ----
    gates_ref[...] = (
        jnp.dot(x_ref[...], wih_f_ref[...], preferred_element_type=jnp.float32)
        + b_f_ref[...])                                        # (T*B, 4H)

    # ---- backward direction: only its first step (on x[T-1]) reaches
    # r_out[-1].  h == 0 and c == 0  =>  whh_b matmul and f*c term vanish. ----
    x_last = x_ref[(T - 1) * B:T * B, :]                       # (B, F_PAD)
    gates_b = (jnp.dot(x_last, wih_b_ref[...],
                       preferred_element_type=jnp.float32)
               + b_b_ref[...])                                 # (B, 4H)
    i_b, _, g_b, o_b = _gate_acts(gates_b, H)
    h_b = o_b * jnp.tanh(i_b * g_b)                            # (B, H)

    # fc tail that depends only on h_b -- issued early, hidden under the
    # forward recurrence; avoids a lane-concat on the critical-path tail.
    out_partial = (jnp.dot(h_b, fcw_b_ref[...],
                           preferred_element_type=jnp.float32)
                   + fcb_ref[...])                             # (B, OUT_PAD)

    # ---- forward recurrence, fully unrolled (T is compile-time; per-step
    # live state is (B,H) h/c plus one (B,4H) gate tile reloaded from scratch) ----
    whh_f = whh_f_ref[...]                                     # (H, 4H)
    h = jnp.zeros((B, H), jnp.float32)
    c = jnp.zeros((B, H), jnp.float32)
    for t in range(T):
        g_x = gates_ref[t * B:(t + 1) * B, :]                  # static, aligned
        gates = g_x + jnp.dot(h, whh_f, preferred_element_type=jnp.float32)
        i, f, g, o = _gate_acts(gates, H)
        c = f * c + i * g
        h = o * jnp.tanh(c)

    # ---- final linear layer, lane-dense (B, 128) unmasked store ----
    out_ref[...] = out_partial + jnp.dot(h, fcw_f_ref[...],
                                         preferred_element_type=jnp.float32)


def prepare_params(params):
    """Precompute kernel-layout weights ONCE (not per forward call):
    tanh-via-sigmoid gate scaling, feature-dim padding, fc split + lane pad."""
    H = HIDDEN

    def scale_g(w):
        # Scale the g-gate columns (pre-activation) by 2: tanh(z) = 2*sig(2z)-1.
        return w.at[..., 2 * H:3 * H].multiply(2.0)

    pad_f = lambda w: jnp.pad(w, ((0, F_PAD - INPUT_SIZE), (0, 0)))
    pad_out = lambda w: jnp.pad(w, ((0, 0), (0, OUT_PAD - NUM_CLASSES)))

    return {
        "wih_f": pad_f(scale_g(params["wih_f"])),       # (F_PAD, 4H)
        "b_f":   scale_g(params["b_f"]),                # (1, 4H)
        "whh_f": scale_g(params["whh_f"]),              # (H, 4H)
        "wih_b": pad_f(scale_g(params["wih_b"])),       # (F_PAD, 4H)
        "b_b":   scale_g(params["b_b"]),                # (1, 4H)
        "fcw_f": pad_out(params["fc_w"][:H]),           # (H, OUT_PAD)
        "fcw_b": pad_out(params["fc_w"][H:]),           # (H, OUT_PAD)
        "fcb":   pad_out(params["fc_b"]),               # (1, OUT_PAD)
    }


def _net_forward_impl(x_bsf, kp):
    """x_bsf: (batch, seq, 46) -> (batch, NUM_CLASSES).  kp = prepare_params(...)."""
    B, T, F = x_bsf.shape
    B_pad = -(-B // 8) * 8                                     # f32 sublanes

    x = jnp.transpose(x_bsf, (1, 0, 2)).astype(jnp.float32)    # (T, B, F)
    x = jnp.pad(x, ((0, 0), (0, B_pad - B), (0, F_PAD - F)))   # lane-dense F
    x2d = x.reshape(T * B_pad, F_PAD)                          # row = t*B_pad + b

    vmem = pl.BlockSpec(memory_space=pltpu.MemorySpace.VMEM)
    out = pl.pallas_call(
        functools.partial(bilstm_fc_kernel, seq_len=T, batch=B_pad),
        out_shape=jax.ShapeDtypeStruct((B_pad, OUT_PAD), jnp.float32),
        in_specs=[vmem] * 9,
        out_specs=vmem,
        scratch_shapes=[pltpu.VMEM((T * B_pad, 4 * HIDDEN), jnp.float32)],
    )(x2d, kp["wih_f"], kp["b_f"], kp["whh_f"],
      kp["wih_b"], kp["b_b"], kp["fcw_f"], kp["fcw_b"], kp["fcb"])
    return out[:B, :NUM_CLASSES]


net_forward = jax.jit(_net_forward_impl)


# ----------------------------- pure-JAX reference -----------------------------

def _lstm_cell_ref(x_t, h, c, wih, whh, b):
    H = h.shape[-1]
    gates = x_t @ wih + h @ whh + b
    i = jax.nn.sigmoid(gates[:, 0 * H:1 * H])
    f = jax.nn.sigmoid(gates[:, 1 * H:2 * H])
    g = jnp.tanh(gates[:, 2 * H:3 * H])
    o = jax.nn.sigmoid(gates[:, 3 * H:4 * H])
    c_new = f * c + i * g
    h_new = o * jnp.tanh(c_new)
    return h_new, c_new


def net_forward_ref(x_bsf, params):
    """Full bidirectional scan, then r_out[-1] -> fc (mirrors the PyTorch module)."""
    x_tbf = jnp.transpose(x_bsf, (1, 0, 2)).astype(jnp.float32)
    B = x_tbf.shape[1]
    init = (jnp.zeros((B, HIDDEN), jnp.float32),
            jnp.zeros((B, HIDDEN), jnp.float32))

    def make_step(wih, whh, b):
        def step(carry, x_t):
            h, c = _lstm_cell_ref(x_t, carry[0], carry[1], wih, whh, b)
            return (h, c), h
        return step

    _, out_f = lax.scan(make_step(params["wih_f"], params["whh_f"],
                                  params["b_f"]), init, x_tbf)
    _, out_b = lax.scan(make_step(params["wih_b"], params["whh_b"],
                                  params["b_b"]), init, x_tbf[::-1])
    out_b = out_b[::-1]
    r_last = jnp.concatenate([out_f[-1], out_b[-1]], axis=-1)
    return r_last @ params["fc_w"] + params["fc_b"]


def init_params(key):
    ks = jax.random.split(key, 10)
    s = 1.0 / jnp.sqrt(HIDDEN)

    def u(k, shape):
        return jax.random.uniform(k, shape, jnp.float32, -s, s)

    return {
        # gate order [i, f, g, o]; stored transposed: (in, 4H)
        "wih_f": u(ks[0], (INPUT_SIZE, 4 * HIDDEN)),
        "whh_f": u(ks[1], (HIDDEN, 4 * HIDDEN)),
        "b_f":   u(ks[2], (1, 4 * HIDDEN)) + u(ks[3], (1, 4 * HIDDEN)),  # b_ih + b_hh
        "wih_b": u(ks[4], (INPUT_SIZE, 4 * HIDDEN)),
        "whh_b": u(ks[5], (HIDDEN, 4 * HIDDEN)),   # used by the reference only
        "b_b":   u(ks[6], (1, 4 * HIDDEN)) + u(ks[7], (1, 4 * HIDDEN)),
        "fc_w":  u(ks[8], (2 * HIDDEN, NUM_CLASSES)),
        "fc_b":  u(ks[9], (1, NUM_CLASSES)),
    }


if __name__ == "__main__":
    key = jax.random.PRNGKey(0)
    pkey, xkey = jax.random.split(key)
    params = init_params(pkey)
    kparams = prepare_params(params)   # one-time kernel-layout prep

    batch, seq = 2, 8
    x = jax.random.normal(xkey, (batch, seq, INPUT_SIZE), jnp.float32)

    out = jax.block_until_ready(net_forward(x, kparams))
    ref = jax.block_until_ready(net_forward_ref(x, params))

    assert out.shape == (batch, NUM_CLASSES), out.shape
    assert jnp.allclose(out, ref, atol=1e-4, rtol=1e-4), (out, ref)
    print("KERNEL_OK")
</pallas_src>

<mosaic_0001>
module attributes {stable_mosaic.version = 11 : i64} {
  func.func @bilstm_fc_kernel(%arg0: memref<64x128xf32, #tpu.memory_space<vmem>>, %arg1: memref<128x128xf32, #tpu.memory_space<vmem>>, %arg2: memref<1x128xf32, #tpu.memory_space<vmem>>, %arg3: memref<32x128xf32, #tpu.memory_space<vmem>>, %arg4: memref<128x128xf32, #tpu.memory_space<vmem>>, %arg5: memref<1x128xf32, #tpu.memory_space<vmem>>, %arg6: memref<32x128xf32, #tpu.memory_space<vmem>>, %arg7: memref<32x128xf32, #tpu.memory_space<vmem>>, %arg8: memref<1x128xf32, #tpu.memory_space<vmem>>, %arg9: memref<8x128xf32, #tpu.memory_space<vmem>>, %arg10: memref<64x128xf32, #tpu.memory_space<vmem>>) attributes {dimension_semantics = [], scalar_prefetch = 0 : i64, scratch_operands = 1 : i64, tpu.core_type = #tpu.core_type<tc>} {
    %c0 = arith.constant 0 : index
    %c0_0 = arith.constant 0 : index
    %0 = vector.load %arg0[%c0, %c0_0] : memref<64x128xf32, #tpu.memory_space<vmem>>, vector<64x128xf32>
    %c0_1 = arith.constant 0 : index
    %c0_2 = arith.constant 0 : index
    %1 = vector.load %arg1[%c0_1, %c0_2] : memref<128x128xf32, #tpu.memory_space<vmem>>, vector<128x128xf32>
    %cst = arith.constant dense<0.000000e+00> : vector<64x128xf32>
    %2 = tpu.matmul %0, %1, %cst {dimension_numbers = #tpu.dot_dimension_numbers<[1], [0], [0], [1], [0, 0, 1, 1], [], []>} : vector<64x128xf32>, vector<128x128xf32>, vector<64x128xf32> -> vector<64x128xf32>
    %c0_3 = arith.constant 0 : index
    %c0_4 = arith.constant 0 : index
    %3 = vector.load %arg2[%c0_3, %c0_4] : memref<1x128xf32, #tpu.memory_space<vmem>>, vector<1x128xf32>
    %4 = vector.broadcast %3 : vector<1x128xf32> to vector<64x128xf32>
    %5 = arith.addf %2, %4 : vector<64x128xf32>
    %c0_5 = arith.constant 0 : index
    %c0_6 = arith.constant 0 : index
    %6 = vector.load %arg10[%c0_5, %c0_6] : memref<64x128xf32, #tpu.memory_space<vmem>>, vector<64x128xf32>
    tpu.vector_store %arg10[%c0_5, %c0_6], %5 {strides = array<i32>} : memref<64x128xf32, #tpu.memory_space<vmem>>, vector<64x128xf32>,
    %c56 = arith.constant 56 : index
    %c0_7 = arith.constant 0 : index
    %7 = vector.load %arg0[%c56, %c0_7] : memref<64x128xf32, #tpu.memory_space<vmem>>, vector<8x128xf32>
    %c0_8 = arith.constant 0 : index
    %c0_9 = arith.constant 0 : index
    %8 = vector.load %arg4[%c0_8, %c0_9] : memref<128x128xf32, #tpu.memory_space<vmem>>, vector<128x128xf32>
    %cst_10 = arith.constant dense<0.000000e+00> : vector<8x128xf32>
    %9 = tpu.matmul %7, %8, %cst_10 {dimension_numbers = #tpu.dot_dimension_numbers<[1], [0], [0], [1], [0, 0, 1, 1], [], []>} : vector<8x128xf32>, vector<128x128xf32>, vector<8x128xf32> -> vector<8x128xf32>
    %c0_11 = arith.constant 0 : index
    %c0_12 = arith.constant 0 : index
    %10 = vector.load %arg5[%c0_11, %c0_12] : memref<1x128xf32, #tpu.memory_space<vmem>>, vector<1x128xf32>
    %11 = vector.broadcast %10 : vector<1x128xf32> to vector<8x128xf32>
    %12 = arith.addf %9, %11 : vector<8x128xf32>
    %13 = arith.negf %12 : vector<8x128xf32>
    %14 = math.exp %13 : vector<8x128xf32>
    %cst_13 = arith.constant 1.000000e+00 : f32
    %15 = vector.broadcast %cst_13 : f32 to vector<8x128xf32>
    %16 = arith.addf %15, %14 : vector<8x128xf32>
    %17 = arith.divf %15, %16 : vector<8x128xf32>
    %18 = vector.extract_strided_slice %17 {offsets = [0, 0], sizes = [8, 32], strides = [1, 1]} : vector<8x128xf32> to vector<8x32xf32>
    %19 = vector.extract_strided_slice %17 {offsets = [0, 64], sizes = [8, 32], strides = [1, 1]} : vector<8x128xf32> to vector<8x32xf32>
    %cst_14 = arith.constant 2.000000e+00 : f32
    %20 = vector.broadcast %cst_14 : f32 to vector<8x32xf32>
    %21 = arith.mulf %20, %19 : vector<8x32xf32>
    %cst_15 = arith.constant 1.000000e+00 : f32
    %22 = vector.broadcast %cst_15 : f32 to vector<8x32xf32>
    %23 = arith.subf %21, %22 : vector<8x32xf32>
    %24 = vector.extract_strided_slice %17 {offsets = [0, 96], sizes = [8, 32], strides = [1, 1]} : vector<8x128xf32> to vector<8x32xf32>
    %25 = arith.mulf %18, %23 : vector<8x32xf32>
    %26 = math.tanh %25 : vector<8x32xf32>
    %27 = arith.mulf %24, %26 : vector<8x32xf32>
    %c0_16 = arith.constant 0 : index
    %c0_17 = arith.constant 0 : index
    %28 = vector.load %arg7[%c0_16, %c0_17] : memref<32x128xf32, #tpu.memory_space<vmem>>, vector<32x128xf32>
    %cst_18 = arith.constant dense<0.000000e+00> : vector<8x128xf32>
    %29 = tpu.matmul %27, %28, %cst_18 {dimension_numbers = #tpu.dot_dimension_numbers<[1], [0], [0], [1], [0, 0, 1, 1], [], []>} : vector<8x32xf32>, vector<32x128xf32>, vector<8x128xf32> -> vector<8x128xf32>
    %c0_19 = arith.constant 0 : index
    %c0_20 = arith.constant 0 : index
    %30 = vector.load %arg8[%c0_19, %c0_20] : memref<1x128xf32, #tpu.memory_space<vmem>>, vector<1x128xf32>
    %31 = vector.broadcast %30 : vector<1x128xf32> to vector<8x128xf32>
    %32 = arith.addf %29, %31 : vector<8x128xf32>
    %c0_21 = arith.constant 0 : index
    %c0_22 = arith.constant 0 : index
    %33 = vector.load %arg3[%c0_21, %c0_22] : memref<32x128xf32, #tpu.memory_space<vmem>>, vector<32x128xf32>
    %cst_23 = arith.constant 0.000000e+00 : f32
    %34 = vector.broadcast %cst_23 : f32 to vector<8x32xf32>
    %cst_24 = arith.constant 0.000000e+00 : f32
    %35 = vector.broadcast %cst_24 : f32 to vector<8x32xf32>
    %c0_25 = arith.constant 0 : index
    %c0_26 = arith.constant 0 : index
    %36 = vector.load %arg10[%c0_25, %c0_26] : memref<64x128xf32, #tpu.memory_space<vmem>>, vector<8x128xf32>
    %cst_27 = arith.constant dense<0.000000e+00> : vector<8x128xf32>
    %37 = tpu.matmul %34, %33, %cst_27 {dimension_numbers = #tpu.dot_dimension_numbers<[1], [0], [0], [1], [0, 0, 1, 1], [], []>} : vector<8x32xf32>, vector<32x128xf32>, vector<8x128xf32> -> vector<8x128xf32>
    %38 = arith.addf %36, %37 : vector<8x128xf32>
    %39 = arith.negf %38 : vector<8x128xf32>
    %40 = math.exp %39 : vector<8x128xf32>
    %cst_28 = arith.constant 1.000000e+00 : f32
    %41 = vector.broadcast %cst_28 : f32 to vector<8x128xf32>
    %42 = arith.addf %41, %40 : vector<8x128xf32>
    %43 = arith.divf %41, %42 : vector<8x128xf32>
    %44 = vector.extract_strided_slice %43 {offsets = [0, 0], sizes = [8, 32], strides = [1, 1]} : vector<8x128xf32> to vector<8x32xf32>
    %45 = vector.extract_strided_slice %43 {offsets = [0, 32], sizes = [8, 32], strides = [1, 1]} : vector<8x128xf32> to vector<8x32xf32>
    %46 = vector.extract_strided_slice %43 {offsets = [0, 64], sizes = [8, 32], strides = [1, 1]} : vector<8x128xf32> to vector<8x32xf32>
    %cst_29 = arith.constant 2.000000e+00 : f32
    %47 = vector.broadcast %cst_29 : f32 to vector<8x32xf32>
    %48 = arith.mulf %47, %46 : vector<8x32xf32>
    %cst_30 = arith.constant 1.000000e+00 : f32
    %49 = vector.broadcast %cst_30 : f32 to vector<8x32xf32>
    %50 = arith.subf %48, %49 : vector<8x32xf32>
    %51 = vector.extract_strided_slice %43 {offsets = [0, 96], sizes = [8, 32], strides = [1, 1]} : vector<8x128xf32> to vector<8x32xf32>
    %52 = arith.mulf %45, %35 : vector<8x32xf32>
    %53 = arith.mulf %44, %50 : vector<8x32xf32>
    %54 = arith.addf %52, %53 : vector<8x32xf32>
    %55 = math.tanh %54 : vector<8x32xf32>
    %56 = arith.mulf %51, %55 : vector<8x32xf32>
    %c8 = arith.constant 8 : index
    %c0_31 = arith.constant 0 : index
    %57 = vector.load %arg10[%c8, %c0_31] : memref<64x128xf32, #tpu.memory_space<vmem>>, vector<8x128xf32>
    %cst_32 = arith.constant dense<0.000000e+00> : vector<8x128xf32>
    %58 = tpu.matmul %56, %33, %cst_32 {dimension_numbers = #tpu.dot_dimension_numbers<[1], [0], [0], [1], [0, 0, 1, 1], [], []>} : vector<8x32xf32>, vector<32x128xf32>, vector<8x128xf32> -> vector<8x128xf32>
    %59 = arith.addf %57, %58 : vector<8x128xf32>
    %60 = arith.negf %59 : vector<8x128xf32>
    %61 = math.exp %60 : vector<8x128xf32>
    %cst_33 = arith.constant 1.000000e+00 : f32
    %62 = vector.broadcast %cst_33 : f32 to vector<8x128xf32>
    %63 = arith.addf %62, %61 : vector<8x128xf32>
    %64 = arith.divf %62, %63 : vector<8x128xf32>
    %65 = vector.extract_strided_slice %64 {offsets = [0, 0], sizes = [8, 32], strides = [1, 1]} : vector<8x128xf32> to vector<8x32xf32>
    %66 = vector.extract_strided_slice %64 {offsets = [0, 32], sizes = [8, 32], strides = [1, 1]} : vector<8x128xf32> to vector<8x32xf32>
    %67 = vector.extract_strided_slice %64 {offsets = [0, 64], sizes = [8, 32], strides = [1, 1]} : vector<8x128xf32> to vector<8x32xf32>
    %cst_34 = arith.constant 2.000000e+00 : f32
    %68 = vector.broadcast %cst_34 : f32 to vector<8x32xf32>
    %69 = arith.mulf %68, %67 : vector<8x32xf32>
    %cst_35 = arith.constant 1.000000e+00 : f32
    %70 = vector.broadcast %cst_35 : f32 to vector<8x32xf32>
    %71 = arith.subf %69, %70 : vector<8x32xf32>
    %72 = vector.extract_strided_slice %64 {offsets = [0, 96], sizes = [8, 32], strides = [1, 1]} : vector<8x128xf32> to vector<8x32xf32>
    %73 = arith.mulf %66, %54 : vector<8x32xf32>
    %74 = arith.mulf %65, %71 : vector<8x32xf32>
    %75 = arith.addf %73, %74 : vector<8x32xf32>
    %76 = math.tanh %75 : vector<8x32xf32>
    %77 = arith.mulf %72, %76 : vector<8x32xf32>
    %c16 = arith.constant 16 : index
    %c0_36 = arith.constant 0 : index
    %78 = vector.load %arg10[%c16, %c0_36] : memref<64x128xf32, #tpu.memory_space<vmem>>, vector<8x128xf32>
    %cst_37 = arith.constant dense<0.000000e+00> : vector<8x128xf32>
    %79 = tpu.matmul %77, %33, %cst_37 {dimension_numbers = #tpu.dot_dimension_numbers<[1], [0], [0], [1], [0, 0, 1, 1], [], []>} : vector<8x32xf32>, vector<32x128xf32>, vector<8x128xf32> -> vector<8x128xf32>
    %80 = arith.addf %78, %79 : vector<8x128xf32>
    %81 = arith.negf %80 : vector<8x128xf32>
    %82 = math.exp %81 : vector<8x128xf32>
    %cst_38 = arith.constant 1.000000e+00 : f32
    %83 = vector.broadcast %cst_38 : f32 to vector<8x128xf32>
    %84 = arith.addf %83, %82 : vector<8x128xf32>
    %85 = arith.divf %83, %84 : vector<8x128xf32>
    %86 = vector.extract_strided_slice %85 {offsets = [0, 0], sizes = [8, 32], strides = [1, 1]} : vector<8x128xf32> to vector<8x32xf32>
    %87 = vector.extract_strided_slice %85 {offsets = [0, 32], sizes = [8, 32], strides = [1, 1]} : vector<8x128xf32> to vector<8x32xf32>
    %88 = vector.extract_strided_slice %85 {offsets = [0, 64], sizes = [8, 32], strides = [1, 1]} : vector<8x128xf32> to vector<8x32xf32>
    %cst_39 = arith.constant 2.000000e+00 : f32
    %89 = vector.broadcast %cst_39 : f32 to vector<8x32xf32>
    %90 = arith.mulf %89, %88 : vector<8x32xf32>
    %cst_40 = arith.constant 1.000000e+00 : f32
    %91 = vector.broadcast %cst_40 : f32 to vector<8x32xf32>
    %92 = arith.subf %90, %91 : vector<8x32xf32>
    %93 = vector.extract_strided_slice %85 {offsets = [0, 96], sizes = [8, 32], strides = [1, 1]} : vector<8x128xf32> to vector<8x32xf32>
    %94 = arith.mulf %87, %75 : vector<8x32xf32>
    %95 = arith.mulf %86, %92 : vector<8x32xf32>
    %96 = arith.addf %94, %95 : vector<8x32xf32>
    %97 = math.tanh %96 : vector<8x32xf32>
    %98 = arith.mulf %93, %97 : vector<8x32xf32>
    %c24 = arith.constant 24 : index
    %c0_41 = arith.constant 0 : index
    %99 = vector.load %arg10[%c24, %c0_41] : memref<64x128xf32, #tpu.memory_space<vmem>>, vector<8x128xf32>
    %cst_42 = arith.constant dense<0.000000e+00> : vector<8x128xf32>
    %100 = tpu.matmul %98, %33, %cst_42 {dimension_numbers = #tpu.dot_dimension_numbers<[1], [0], [0], [1], [0, 0, 1, 1], [], []>} : vector<8x32xf32>, vector<32x128xf32>, vector<8x128xf32> -> vector<8x128xf32>
    %101 = arith.addf %99, %100 : vector<8x128xf32>
    %102 = arith.negf %101 : vector<8x128xf32>
    %103 = math.exp %102 : vector<8x128xf32>
    %cst_43 = arith.constant 1.000000e+00 : f32
    %104 = vector.broadcast %cst_43 : f32 to vector<8x128xf32>
    %105 = arith.addf %104, %103 : vector<8x128xf32>
    %106 = arith.divf %104, %105 : vector<8x128xf32>
    %107 = vector.extract_strided_slice %106 {offsets = [0, 0], sizes = [8, 32], strides = [1, 1]} : vector<8x128xf32> to vector<8x32xf32>
    %108 = vector.extract_strided_slice %106 {offsets = [0, 32], sizes = [8, 32], strides = [1, 1]} : vector<8x128xf32> to vector<8x32xf32>
    %109 = vector.extract_strided_slice %106 {offsets = [0, 64], sizes = [8, 32], strides = [1, 1]} : vector<8x128xf32> to vector<8x32xf32>
    %cst_44 = arith.constant 2.000000e+00 : f32
    %110 = vector.broadcast %cst_44 : f32 to vector<8x32xf32>
    %111 = arith.mulf %110, %109 : vector<8x32xf32>
    %cst_45 = arith.constant 1.000000e+00 : f32
    %112 = vector.broadcast %cst_45 : f32 to vector<8x32xf32>
    %113 = arith.subf %111, %112 : vector<8x32xf32>
    %114 = vector.extract_strided_slice %106 {offsets = [0, 96], sizes = [8, 32], strides = [1, 1]} : vector<8x128xf32> to vector<8x32xf32>
    %115 = arith.mulf %108, %96 : vector<8x32xf32>
    %116 = arith.mulf %107, %113 : vector<8x32xf32>
    %117 = arith.addf %115, %116 : vector<8x32xf32>
    %118 = math.tanh %117 : vector<8x32xf32>
    %119 = arith.mulf %114, %118 : vector<8x32xf32>
    %c32 = arith.constant 32 : index
    %c0_46 = arith.constant 0 : index
    %120 = vector.load %arg10[%c32, %c0_46] : memref<64x128xf32, #tpu.memory_space<vmem>>, vector<8x128xf32>
    %cst_47 = arith.constant dense<0.000000e+00> : vector<8x128xf32>
    %121 = tpu.matmul %119, %33, %cst_47 {dimension_numbers = #tpu.dot_dimension_numbers<[1], [0], [0], [1], [0, 0, 1, 1], [], []>} : vector<8x32xf32>, vector<32x128xf32>, vector<8x128xf32> -> vector<8x128xf32>
    %122 = arith.addf %120, %121 : vector<8x128xf32>
    %123 = arith.negf %122 : vector<8x128xf32>
    %124 = math.exp %123 : vector<8x128xf32>
    %cst_48 = arith.constant 1.000000e+00 : f32
    %125 = vector.broadcast %cst_48 : f32 to vector<8x128xf32>
    %126 = arith.addf %125, %124 : vector<8x128xf32>
    %127 = arith.divf %125, %126 : vector<8x128xf32>
    %128 = vector.extract_strided_slice %127 {offsets = [0, 0], sizes = [8, 32], strides = [1, 1]} : vector<8x128xf32> to vector<8x32xf32>
    %129 = vector.extract_strided_slice %127 {offsets = [0, 32], sizes = [8, 32], strides = [1, 1]} : vector<8x128xf32> to vector<8x32xf32>
    %130 = vector.extract_strided_slice %127 {offsets = [0, 64], sizes = [8, 32], strides = [1, 1]} : vector<8x128xf32> to vector<8x32xf32>
    %cst_49 = arith.constant 2.000000e+00 : f32
    %131 = vector.broadcast %cst_49 : f32 to vector<8x32xf32>
    %132 = arith.mulf %131, %130 : vector<8x32xf32>
    %cst_50 = arith.constant 1.000000e+00 : f32
    %133 = vector.broadcast %cst_50 : f32 to vector<8x32xf32>
    %134 = arith.subf %132, %133 : vector<8x32xf32>
    %135 = vector.extract_strided_slice %127 {offsets = [0, 96], sizes = [8, 32], strides = [1, 1]} : vector<8x128xf32> to vector<8x32xf32>
    %136 = arith.mulf %129, %117 : vector<8x32xf32>
    %137 = arith.mulf %128, %134 : vector<8x32xf32>
    %138 = arith.addf %136, %137 : vector<8x32xf32>
    %139 = math.tanh %138 : vector<8x32xf32>
    %140 = arith.mulf %135, %139 : vector<8x32xf32>
    %c40 = arith.constant 40 : index
    %c0_51 = arith.constant 0 : index
    %141 = vector.load %arg10[%c40, %c0_51] : memref<64x128xf32, #tpu.memory_space<vmem>>, vector<8x128xf32>
    %cst_52 = arith.constant dense<0.000000e+00> : vector<8x128xf32>
    %142 = tpu.matmul %140, %33, %cst_52 {dimension_numbers = #tpu.dot_dimension_numbers<[1], [0], [0], [1], [0, 0, 1, 1], [], []>} : vector<8x32xf32>, vector<32x128xf32>, vector<8x128xf32> -> vector<8x128xf32>
    %143 = arith.addf %141, %142 : vector<8x128xf32>
    %144 = arith.negf %143 : vector<8x128xf32>
    %145 = math.exp %144 : vector<8x128xf32>
    %cst_53 = arith.constant 1.000000e+00 : f32
    %146 = vector.broadcast %cst_53 : f32 to vector<8x128xf32>
    %147 = arith.addf %146, %145 : vector<8x128xf32>
    %148 = arith.divf %146, %147 : vector<8x128xf32>
    %149 = vector.extract_strided_slice %148 {offsets = [0, 0], sizes = [8, 32], strides = [1, 1]} : vector<8x128xf32> to vector<8x32xf32>
    %150 = vector.extract_strided_slice %148 {offsets = [0, 32], sizes = [8, 32], strides = [1, 1]} : vector<8x128xf32> to vector<8x32xf32>
    %151 = vector.extract_strided_slice %148 {offsets = [0, 64], sizes = [8, 32], strides = [1, 1]} : vector<8x128xf32> to vector<8x32xf32>
    %cst_54 = arith.constant 2.000000e+00 : f32
    %152 = vector.broadcast %cst_54 : f32 to vector<8x32xf32>
    %153 = arith.mulf %152, %151 : vector<8x32xf32>
    %cst_55 = arith.constant 1.000000e+00 : f32
    %154 = vector.broadcast %cst_55 : f32 to vector<8x32xf32>
    %155 = arith.subf %153, %154 : vector<8x32xf32>
    %156 = vector.extract_strided_slice %148 {offsets = [0, 96], sizes = [8, 32], strides = [1, 1]} : vector<8x128xf32> to vector<8x32xf32>
    %157 = arith.mulf %150, %138 : vector<8x32xf32>
    %158 = arith.mulf %149, %155 : vector<8x32xf32>
    %159 = arith.addf %157, %158 : vector<8x32xf32>
    %160 = math.tanh %159 : vector<8x32xf32>
    %161 = arith.mulf %156, %160 : vector<8x32xf32>
    %c48 = arith.constant 48 : index
    %c0_56 = arith.constant 0 : index
    %162 = vector.load %arg10[%c48, %c0_56] : memref<64x128xf32, #tpu.memory_space<vmem>>, vector<8x128xf32>
    %cst_57 = arith.constant dense<0.000000e+00> : vector<8x128xf32>
    %163 = tpu.matmul %161, %33, %cst_57 {dimension_numbers = #tpu.dot_dimension_numbers<[1], [0], [0], [1], [0, 0, 1, 1], [], []>} : vector<8x32xf32>, vector<32x128xf32>, vector<8x128xf32> -> vector<8x128xf32>
    %164 = arith.addf %162, %163 : vector<8x128xf32>
    %165 = arith.negf %164 : vector<8x128xf32>
    %166 = math.exp %165 : vector<8x128xf32>
    %cst_58 = arith.constant 1.000000e+00 : f32
    %167 = vector.broadcast %cst_58 : f32 to vector<8x128xf32>
    %168 = arith.addf %167, %166 : vector<8x128xf32>
    %169 = arith.divf %167, %168 : vector<8x128xf32>
    %170 = vector.extract_strided_slice %169 {offsets = [0, 0], sizes = [8, 32], strides = [1, 1]} : vector<8x128xf32> to vector<8x32xf32>
    %171 = vector.extract_strided_slice %169 {offsets = [0, 32], sizes = [8, 32], strides = [1, 1]} : vector<8x128xf32> to vector<8x32xf32>
    %172 = vector.extract_strided_slice %169 {offsets = [0, 64], sizes = [8, 32], strides = [1, 1]} : vector<8x128xf32> to vector<8x32xf32>
    %cst_59 = arith.constant 2.000000e+00 : f32
    %173 = vector.broadcast %cst_59 : f32 to vector<8x32xf32>
    %174 = arith.mulf %173, %172 : vector<8x32xf32>
    %cst_60 = arith.constant 1.000000e+00 : f32
    %175 = vector.broadcast %cst_60 : f32 to vector<8x32xf32>
    %176 = arith.subf %174, %175 : vector<8x32xf32>
    %177 = vector.extract_strided_slice %169 {offsets = [0, 96], sizes = [8, 32], strides = [1, 1]} : vector<8x128xf32> to vector<8x32xf32>
    %178 = arith.mulf %171, %159 : vector<8x32xf32>
    %179 = arith.mulf %170, %176 : vector<8x32xf32>
    %180 = arith.addf %178, %179 : vector<8x32xf32>
    %181 = math.tanh %180 : vector<8x32xf32>
    %182 = arith.mulf %177, %181 : vector<8x32xf32>
    %c56_61 = arith.constant 56 : index
    %c0_62 = arith.constant 0 : index
    %183 = vector.load %arg10[%c56_61, %c0_62] : memref<64x128xf32, #tpu.memory_space<vmem>>, vector<8x128xf32>
    %cst_63 = arith.constant dense<0.000000e+00> : vector<8x128xf32>
    %184 = tpu.matmul %182, %33, %cst_63 {dimension_numbers = #tpu.dot_dimension_numbers<[1], [0], [0], [1], [0, 0, 1, 1], [], []>} : vector<8x32xf32>, vector<32x128xf32>, vector<8x128xf32> -> vector<8x128xf32>
    %185 = arith.addf %183, %184 : vector<8x128xf32>
    %186 = arith.negf %185 : vector<8x128xf32>
    %187 = math.exp %186 : vector<8x128xf32>
    %cst_64 = arith.constant 1.000000e+00 : f32
    %188 = vector.broadcast %cst_64 : f32 to vector<8x128xf32>
    %189 = arith.addf %188, %187 : vector<8x128xf32>
    %190 = arith.divf %188, %189 : vector<8x128xf32>
    %191 = vector.extract_strided_slice %190 {offsets = [0, 0], sizes = [8, 32], strides = [1, 1]} : vector<8x128xf32> to vector<8x32xf32>
    %192 = vector.extract_strided_slice %190 {offsets = [0, 32], sizes = [8, 32], strides = [1, 1]} : vector<8x128xf32> to vector<8x32xf32>
    %193 = vector.extract_strided_slice %190 {offsets = [0, 64], sizes = [8, 32], strides = [1, 1]} : vector<8x128xf32> to vector<8x32xf32>
    %cst_65 = arith.constant 2.000000e+00 : f32
    %194 = vector.broadcast %cst_65 : f32 to vector<8x32xf32>
    %195 = arith.mulf %194, %193 : vector<8x32xf32>
    %cst_66 = arith.constant 1.000000e+00 : f32
    %196 = vector.broadcast %cst_66 : f32 to vector<8x32xf32>
    %197 = arith.subf %195, %196 : vector<8x32xf32>
    %198 = vector.extract_strided_slice %190 {offsets = [0, 96], sizes = [8, 32], strides = [1, 1]} : vector<8x128xf32> to vector<8x32xf32>
    %199 = arith.mulf %192, %180 : vector<8x32xf32>
    %200 = arith.mulf %191, %197 : vector<8x32xf32>
    %201 = arith.addf %199, %200 : vector<8x32xf32>
    %202 = math.tanh %201 : vector<8x32xf32>
    %203 = arith.mulf %198, %202 : vector<8x32xf32>
    %c0_67 = arith.constant 0 : index
    %c0_68 = arith.constant 0 : index
    %204 = vector.load %arg6[%c0_67, %c0_68] : memref<32x128xf32, #tpu.memory_space<vmem>>, vector<32x128xf32>
    %cst_69 = arith.constant dense<0.000000e+00> : vector<8x128xf32>
    %205 = tpu.matmul %203, %204, %cst_69 {dimension_numbers = #tpu.dot_dimension_numbers<[1], [0], [0], [1], [0, 0, 1, 1], [], []>} : vector<8x32xf32>, vector<32x128xf32>, vector<8x128xf32> -> vector<8x128xf32>
    %206 = arith.addf %32, %205 : vector<8x128xf32>
    %c0_70 = arith.constant 0 : index
    %c0_71 = arith.constant 0 : index
    %207 = vector.load %arg9[%c0_70, %c0_71] : memref<8x128xf32, #tpu.memory_space<vmem>>, vector<8x128xf32>
    tpu.vector_store %arg9[%c0_70, %c0_71], %206 {strides = array<i32>} : memref<8x128xf32, #tpu.memory_space<vmem>>, vector<8x128xf32>,
    return
  }
}

</mosaic_0001>

<bundles_post_ra>
// kernel: _net_forward_impl.1
= control target key start
LH: loop header
LB: loop body
LE: loop exit
PB: predicated region body
PF: predicated region fallthrough
CT: control target
= control target key end

     0   :  { %14 = vsyncpa [#allocation4], 0  ;;  %s2281_s0 = inlined_call_operand.vmem [shape: f32[64,128], index: 0, kind: input, shape index: {}]   ;;  %s2282_s1 = inlined_call_operand.vmem [shape: f32[128,128], index: 1, kind: input, shape index: {}]   ;;  %s2283_s2 = inlined_call_operand.vmem [shape: f32[1,128], index: 2, kind: input, shape index: {}]   ;;  %s2284_s3 = inlined_call_operand.hbm [shape: f32[32,128], index: 3, kind: input, shape index: {}]   ;;  %s2285_s4 = inlined_call_operand.hbm [shape: f32[128,128], index: 4, kind: input, shape index: {}]   ;;  %s2286_s5 = inlined_call_operand.vmem [shape: f32[1,128], index: 5, kind: input, shape index: {}]   ;;  %s2287_s6 = inlined_call_operand.hbm [shape: f32[32,128], index: 6, kind: input, shape index: {}]   ;;  %s2288_s7 = inlined_call_operand.hbm [shape: f32[32,128], index: 7, kind: input, shape index: {}]   ;;  %s2289_s8 = inlined_call_operand.vmem [shape: f32[1,128], index: 8, kind: input, shape index: {}]   ;;  %s2290_s9 = inlined_call_operand.vmem [shape: f32[8,128], index: 9, kind: output, shape index: {}]  }
   0x1   :  { %15 = vsyncpa [#allocation6], 0 }
   0x2   :  { %16 = vsyncpa [#allocation9], 0  ;;  %s1926_s30 = smov [#allocation5]   ;;  %s1927_s11 = smov [#allocation3]  }
   0x3   :  { %s40_s10 = sshll.u32 %s1926_s30, 4  ;;  %s28_s12 = sshll.u32 %s1927_s11, 4  ;;  %s41_s10 = int_to_ptr.vmem [resolvable:$true] %s40_s10  ;;  %s1988_s12 = int_to_ptr.vmem [resolvable:$true] %s28_s12 }
   0x4   :  { %s1832_s15 = scalar_lea.hbm %s2285_s4, 2048 }
   0x5   :  { %p1833_p0 = scmp.ne.s32.totalorder %s2285_s4, %s1832_s15  ;;  %p1836_p1 = scmp.lt.u32.totalorder %s1832_s15, %s2285_s4 }
   0x7   :  { %p1838_p2 = pnand %p1836_p1, %p1833_p0 }
   0x9   :  { %1841 = shalt.err (!%p1838_p2)
}
   0xa   :  { %s1842_s20 = scalar_lea.vmem %s41_s10, 2048  ;;  %p1847_p4 = scmp.lt.s32.totalorder %s41_s10, %s41_s10 }
   0xb   :  { %p1843_p3 = scmp.ne.s32.totalorder %s41_s10, %s1842_s20  ;;  %p1848_p5 = scmp.lt.s32.totalorder %s1842_s20, %s1842_s20 }
   0xd   :  { %p1849_p6 = por %p1848_p5, %p1847_p4 }
   0xf   :  { %p1850_p7 = pnand %p1849_p6, %p1843_p3 }
  0x11   :  { %1853 = shalt.err (!%p1850_p7)
}
  0x12   :  { %s1928_s21 = smov 128   ;;  %s1929_s22 = smov 8  }
  0x13   :  { %46 = dma.hbm_to_vmem [thread:$0]  %s2285_s4, 2048, %s41_s10, [#allocation6], %s1928_s21, %s1928_s21, %s1929_s22  }
  0x14   :  { %s1854_s27 = scalar_lea.hbm %s2284_s3, 512 }
  0x15   :  { %p1855_p8 = scmp.ne.s32.totalorder %s2284_s3, %s1854_s27  ;;  %p1858_p9 = scmp.lt.u32.totalorder %s1854_s27, %s2284_s3 }
  0x17   :  { %p1860_p10 = pnand %p1858_p9, %p1855_p8 }
  0x19   :  { %1863 = shalt.err (!%p1860_p10)
}
  0x1a   :  { %s1864_s13 = scalar_lea.vmem %s1988_s12, 512  ;;  %p1869_p12 = scmp.lt.s32.totalorder %s1988_s12, %s1988_s12 }
  0x1b   :  { %p1865_p11 = scmp.ne.s32.totalorder %s1988_s12, %s1864_s13  ;;  %p1870_p13 = scmp.lt.s32.totalorder %s1864_s13, %s1864_s13 }
  0x1d   :  { %p1871_p0 = por %p1870_p13, %p1869_p12 }
  0x1f   :  { %p1872_p1 = pnand %p1871_p0, %p1865_p11 }
  0x21   :  { %1875 = shalt.err (!%p1872_p1)
}
  0x22   :  { %34 = dma.hbm_to_vmem [thread:$0]  %s2284_s3, 512, %s1988_s12, [#allocation4], %s1928_s21, %s1928_s21, %s1929_s22  }
  0x23   :  { %s1930_s14 = smov [#allocation7]   ;;  %s1931_s16 = smov [#allocation8]  }
  0x24   :  { %s54_s15 = sshll.u32 %s1930_s14, 4  ;;  %s66_s17 = sshll.u32 %s1931_s16, 4  ;;  %s55_s15 = int_to_ptr.vmem [resolvable:$true] %s54_s15  ;;  %s2025_s17 = int_to_ptr.vmem [resolvable:$true] %s66_s17 }
  0x25   :  { %s1876_s20 = scalar_lea.hbm %s2287_s6, 512 }
  0x26   :  { %p1877_p2 = scmp.ne.s32.totalorder %s2287_s6, %s1876_s20  ;;  %p1880_p3 = scmp.lt.u32.totalorder %s1876_s20, %s2287_s6 }
  0x28   :  { %p1882_p4 = pnand %p1880_p3, %p1877_p2 }
  0x2a   :  { %1885 = shalt.err (!%p1882_p4)
}
  0x2b   :  { %s1886_s3 = scalar_lea.vmem %s55_s15, 512  ;;  %p1891_p6 = scmp.lt.s32.totalorder %s55_s15, %s55_s15 }
  0x2c   :  { %p1887_p5 = scmp.ne.s32.totalorder %s55_s15, %s1886_s3  ;;  %p1892_p7 = scmp.lt.s32.totalorder %s1886_s3, %s1886_s3 }
  0x2e   :  { %p1893_p8 = por %p1892_p7, %p1891_p6 }
  0x30   :  { %p1894_p9 = pnand %p1893_p8, %p1887_p5 }
  0x32   :  { %1897 = shalt.err (!%p1894_p9)
}
  0x33   :  { %60 = dma.hbm_to_vmem [thread:$0]  %s2287_s6, 512, %s55_s15, [#allocation6], %s1928_s21, %s1928_s21, %s1929_s22  }
  0x34   :  { %s1898_s30 = scalar_lea.hbm %s2288_s7, 512 }
  0x35   :  { %p1899_p10 = scmp.ne.s32.totalorder %s2288_s7, %s1898_s30  ;;  %p1902_p11 = scmp.lt.u32.totalorder %s1898_s30, %s2288_s7 }
  0x37   :  { %p1904_p12 = pnand %p1902_p11, %p1899_p10 }
  0x39   :  { %1907 = shalt.err (!%p1904_p12)
}
  0x3a   :  { %s1908_s14 = scalar_lea.vmem %s2025_s17, 512  ;;  %p1913_p0 = scmp.lt.s32.totalorder %s2025_s17, %s2025_s17 }
  0x3b   :  { %p1909_p13 = scmp.ne.s32.totalorder %s2025_s17, %s1908_s14  ;;  %p1914_p1 = scmp.lt.s32.totalorder %s1908_s14, %s1908_s14 }
  0x3d   :  { %p1915_p2 = por %p1914_p1, %p1913_p0 }
  0x3f   :  { %p1916_p3 = pnand %p1915_p2, %p1909_p13 }
  0x41   :  { %1919 = shalt.err (!%p1916_p3)
}
  0x42   :  { %72 = dma.hbm_to_vmem [thread:$0]  %s2288_s7, 512, %s2025_s17, [#allocation9], %s1928_s21, %s1928_s21, %s1929_s22  }
  0x43   :  { %1920 = dma.done.wait [#allocation4], 512  }
  0x44   :  { %1921 = vsyncadd [#allocation4], 4294966784 }
  0x45   :  { %1922 = dma.done.wait [#allocation6], 2560  }
  0x46   :  { %1923 = vsyncadd [#allocation6], 4294964736 }
  0x47   :  { %1924 = dma.done.wait [#allocation9], 512  }
  0x48   :  { %1925 = vsyncadd [#allocation9], 4294966784  ;;  %v1932_v0 = vmov 0.0|0.0   ;;  %vm1933_vm0 = vmmov 0   ;;  %v1934_v1 = vmov 0.0   ;;  %v95_v2 = vld [vmem:[%s2282_s1] sm:$0xff] }
  0x49   :  { %1679 = vmatprep.subr.bf16.mxu1 %v1932_v0  ;;  %1534 = vmatprep.mubr.msk.f32.mxu1 %vm1933_vm0, %v1934_v1  ;;  %v96_v3 = vld [vmem:[%s2282_s1 + $0x8] sm:$0xff]  ;;  %v97_v4 = vld [vmem:[%s2282_s1 + $0x10] sm:$0xff]  ;;  %v98_v6 = vld [vmem:[%s2282_s1 + $0x18] sm:$0xff]  ;;  %s1937_s16 = smov 96   ;;  %vm358_vm1 = vcmask 261120  }
  0x4a   :  { %v1647_v5 = vpack.c.bf16 %v96_v3, %v95_v2  ;;  %v1651_v7 = vpack.c.bf16 %v98_v6, %v97_v4  ;;  %v99_v8 = vld [vmem:[%s2282_s1 + $0x20] sm:$0xff]  ;;  %v100_v9 = vld [vmem:[%s2282_s1 + $0x28] sm:$0xff]  ;;  %v234_v14 = vld [vmem:[#allocation5 + $0x10] sm:$0xff] }
  0x4b   :  { %v232_v10 = vld [vmem:[#allocation5] sm:$0xff]  ;;  %v233_v11 = vld [vmem:[#allocation5 + $0x8] sm:$0xff]  ;;  %v1655_v12 = vpack.c.bf16 %v100_v9, %v99_v8  ;;  %v235_v15 = vld [vmem:[#allocation5 + $0x18] sm:$0xff] }
  0x4c   :  { %1648 = vmatprep.subr.bf16.mxu0 %v1647_v5  ;;  %v1680_v13 = vpack.c.bf16 %v233_v11, %v232_v10  ;;  %v101_v16 = vld [vmem:[%s2282_s1 + $0x30] sm:$0xff]  ;;  %v102_v17 = vld [vmem:[%s2282_s1 + $0x38] sm:$0xff]  ;;  %v1683_v18 = vpack.c.bf16 %v235_v15, %v234_v14  ;;  %v87_v19 = vld [vmem:[%s2281_s0] sm:$0xff] }
  0x4d   :  { %1650 = vmatpush3.bf16.msra.mxu0 %v1647_v5  ;;  %v236_v20 = vld [vmem:[#allocation5 + $0x20] sm:$0xff]  ;;  %v237_v21 = vld [vmem:[#allocation5 + $0x28] sm:$0xff]  ;;  %v1659_v22 = vpack.c.bf16 %v102_v17, %v101_v16  ;;  %1490 = vmatprep.mubr.f32.mxu0 %v87_v19  ;;  %v238_v26 = vld [vmem:[#allocation5 + $0x30] sm:$0xff] }
  0x4e   :  { %1652 = vmatprep.subr.bf16.mxu0 %v1651_v7  ;;  %1681 = vmatpush3.bf16.msra.mxu1 %v1680_v13  ;;  %v103_v23 = vld [vmem:[%s2282_s1 + $0x40] sm:$0xff]  ;;  %v104_v24 = vld [vmem:[%s2282_s1 + $0x48] sm:$0xff]  ;;  %v1686_v25 = vpack.c.bf16 %v237_v21, %v236_v20  ;;  %v239_v27 = vld [vmem:[#allocation5 + $0x38] sm:$0xff] }
  0x4f   :  { %1682 = vmatprep.subr.bf16.mxu1 %v1932_v0  ;;  %v1663_v28 = vpack.c.bf16 %v104_v24, %v103_v23  ;;  %v105_v29 = vld [vmem:[%s2282_s1 + $0x50] sm:$0xff]  ;;  %v106_v30 = vld [vmem:[%s2282_s1 + $0x58] sm:$0xff]  ;;  %v1689_v31 = vpack.c.bf16 %v239_v27, %v238_v26  ;;  %v240_v32 = vld [vmem:[#allocation5 + $0x40] sm:$0xff] }
  0x50   :  { %v241_v33 = vld [vmem:[#allocation5 + $0x48] sm:$0xff]  ;;  %v1667_v34 = vpack.c.bf16 %v106_v30, %v105_v29  ;;  %v107_v35 = vld [vmem:[%s2282_s1 + $0x60] sm:$0xff]  ;;  %v242_v38 = vld [vmem:[#allocation5 + $0x50] sm:$0xff] }
  0x51   :  { %1654 = vmatpush3.bf16.msra.mxu0 %v1651_v7  ;;  %v108_v36 = vld [vmem:[%s2282_s1 + $0x68] sm:$0xff]  ;;  %v1692_v37 = vpack.c.bf16 %v241_v33, %v240_v32  ;;  %v243_v39 = vld [vmem:[#allocation5 + $0x58] sm:$0xff]  ;;  %v109_v41 = vld [vmem:[%s2282_s1 + $0x70] sm:$0xff] }
  0x52   :  { %1656 = vmatprep.subr.bf16.mxu0 %v1655_v12  ;;  %1684 = vmatpush3.bf16.msra.mxu1 %v1683_v18  ;;  %v1671_v40 = vpack.c.bf16 %v108_v36, %v107_v35  ;;  %v110_v42 = vld [vmem:[%s2282_s1 + $0x78] sm:$0xff]  ;;  %v1695_v43 = vpack.c.bf16 %v243_v39, %v242_v38  ;;  %v244_v44 = vld [vmem:[#allocation5 + $0x60] sm:$0xff]  ;;  %v245_v45 = vld [vmem:[#allocation5 + $0x68] sm:$0xff] }
  0x53   :  { %1685 = vmatprep.subr.bf16.mxu1 %v1932_v0  ;;  %v1675_v46 = vpack.c.bf16 %v110_v42, %v109_v41  ;;  %v1698_v47 = vpack.c.bf16 %v245_v45, %v244_v44  ;;  %v246_v48 = vld [vmem:[#allocation5 + $0x70] sm:$0xff]  ;;  %v247_v49 = vld [vmem:[#allocation5 + $0x78] sm:$0xff]  ;;  %v431_v50 = vld [vmem:[#allocation3] sm:$0xff] }
  0x54   :  { %v432_v51 = vld [vmem:[#allocation3 + $0x8] sm:$0xff]  ;;  %v1701_v52 = vpack.c.bf16 %v247_v49, %v246_v48  ;;  %v89_v55 = vld [vmem:[%s2281_s0 + $0x10] sm:$0xff]  ;;  %v434_v57 = vld [vmem:[#allocation3 + $0x18] sm:$0xff] }
  0x55   :  { %1658 = vmatpush3.bf16.msra.mxu0 %v1655_v12  ;;  %v88_v53 = vld [vmem:[%s2281_s0 + $0x8] sm:$0xff]  ;;  %v2125_v54 = vpack.c.bf16 %v432_v51, %v431_v50  ;;  %v433_v56 = vld [vmem:[#allocation3 + $0x10] sm:$0xff]  ;;  %v90_v58 = vld [vmem:[%s2281_s0 + $0x18] sm:$0xff] }
  0x56   :  { %1660 = vmatprep.subr.bf16.mxu0 %v1659_v22  ;;  %1687 = vmatpush3.bf16.msra.mxu1 %v1686_v25  ;;  %v2136_v59 = vpack.c.bf16 %v434_v57, %v433_v56  ;;  %v91_v60 = vld [vmem:[%s2281_s0 + $0x20] sm:$0xff]  ;;  %v94_v61 = vld [vmem:[%s2281_s0 + $0x38] sm:$0xff]  ;;  %v92_v62 = vld [vmem:[%s2281_s0 + $0x28] sm:$0xff] }
  0x57   :  { %1688 = vmatprep.subr.bf16.mxu1 %v1932_v0  ;;  %v93_v63 = vld [vmem:[%s2281_s0 + $0x30] sm:$0xff]  ;;  %v1337_v2 = vld [vmem:[%s2283_s2] ss:$0 sm:$0xff]  ;;  %s1935_s2 = smov 64   ;;  %v347_v48 = vld [vmem:[#allocation8 + $0x18] sm:$0xff] }
  0x58   :  { %v1338_v8 = vld [vmem:[%s2286_s5] ss:$0 sm:$0xff]  ;;  %s1936_s5 = smov 32  }
  0x59   :  { %1662 = vmatpush3.bf16.msra.mxu0 %v1659_v22  ;;  %v344_v42 = vld [vmem:[#allocation8] sm:$0xff] }
  0x5a   :  { %1664 = vmatprep.subr.bf16.mxu0 %v1663_v28  ;;  %1690 = vmatpush3.bf16.msra.mxu1 %v1689_v31 }
  0x5b   :  { %1691 = vmatprep.subr.bf16.mxu1 %v1932_v0 }
  0x5d   :  { %1666 = vmatpush3.bf16.msra.mxu0 %v1663_v28 }
  0x5e   :  { %1668 = vmatprep.subr.bf16.mxu0 %v1667_v34  ;;  %1693 = vmatpush3.bf16.msra.mxu1 %v1692_v37 }
  0x5f   :  { %1694 = vmatprep.subr.bf16.mxu1 %v1932_v0 }
  0x61   :  { %1670 = vmatpush3.bf16.msra.mxu0 %v1667_v34 }
  0x62   :  { %1672 = vmatprep.subr.bf16.mxu0 %v1671_v40  ;;  %1696 = vmatpush3.bf16.msra.mxu1 %v1695_v43  ;;  %v345_v43 = vld [vmem:[#allocation8 + $0x8] sm:$0xff] }
  0x63   :  { %1697 = vmatprep.subr.bf16.mxu1 %v1932_v0  ;;  %v1704_v44 = vpack.c.bf16 %v345_v43, %v344_v42 }
  0x65   :  { %1674 = vmatpush3.bf16.msra.mxu0 %v1671_v40 }
  0x66   :  { %1676 = vmatprep.subr.bf16.mxu0 %v1675_v46  ;;  %1699 = vmatpush3.bf16.msra.mxu1 %v1698_v47  ;;  %v346_v47 = vld [vmem:[#allocation8 + $0x10] sm:$0xff] }
  0x67   :  { %1700 = vmatprep.subr.bf16.mxu1 %v1932_v0  ;;  %v1707_v50 = vpack.c.bf16 %v347_v48, %v346_v47 }
  0x69   :  { %1678 = vmatpush3.bf16.msra.mxu0 %v1675_v46 }
  0x6a   :  { %1709 = vmatprep.subr.bf16.mxu0 %v1932_v0  ;;  %1702 = vmatpush3.bf16.msra.mxu1 %v1701_v52 }
  0x6b   :  { %1703 = vmatprep.subr.bf16.mxu1 %v1932_v0 }
  0x6c   :  { %1491 = vmatmul.mubr.f32.vlgmr.msra.gmra.mrb[0].mxu0 %v88_v53 }
  0x6d   :  { %1711 = vmatpush3.bf16.msra.mxu0 %v2125_v54  ;;  %1493 = vmatprep.mubr.f32.mxu0 %v89_v55 }
  0x6e   :  { %1712 = vmatprep.subr.bf16.mxu0 %v1932_v0  ;;  %1535 = vmatmul.mubr.f32.vlgmr.msra.gmra.mrb[0].mxu1 %v94_v61 }
  0x6f   :  { %1545 = vmatprep.mubr.msk.f32.mxu1 %vm1933_vm0, %v1934_v1  ;;  %1705 = vmatpush3.bf16.msra.mxu1 %v1704_v44 }
  0x70   :  { %1494 = vmatmul.mubr.f32.gmra.mrb[2].mxu0 %v90_v58  ;;  %1706 = vmatprep.subr.bf16.mxu1 %v1932_v0 }
  0x71   :  { %1496 = vmatprep.mubr.f32.mxu0 %v91_v60  ;;  %1714 = vmatpush3.bf16.msra.mxu0 %v2136_v59 }
  0x72   :  { %1721 = vmatprep.subr.bf16.mxu0 %v1932_v0 }
  0x73   :  { %1708 = vmatpush3.bf16.msra.mxu1 %v1707_v50 }
  0x74   :  { %1497 = vmatmul.mubr.f32.gmra.mrb[4].mxu0 %v92_v62  ;;  %1715 = vmatprep.subr.bf16.mxu1 %v1932_v0 }
  0x75   :  { %1499 = vmatprep.mubr.f32.mxu0 %v93_v63 }
  0x78   :  { %1500 = vmatmul.mubr.f32.gmra.mrb[6].mxu0 %v94_v61 }
  0x79   :  { %1556 = vmatprep.mubr.msk.f32.mxu0 %vm1933_vm0, %v1934_v1 }
  0x7c   :  { %1557 = vmatmul.mubr.f32.vlgmr.msra.gmra.mrb[8].mxu0 %v1934_v1 }
  0x7d   :  { %1723 = vmatpush3.bf16.msra.mxu0 %v2125_v54  ;;  %1578 = vmatprep.mubr.msk.f32.mxu0 %vm1933_vm0, %v1934_v1 }
  0x7e   :  { %1724 = vmatprep.subr.bf16.mxu0 %v1932_v0 }
  0x81   :  { %1726 = vmatpush3.bf16.msra.mxu0 %v2136_v59 }
  0x82   :  { %1733 = vmatprep.subr.bf16.mxu0 %v1932_v0 }
 0x13f   :  { %v1492_v3 = vpop.f32.mrb[0].mxu0 }
 0x140   :  { %v2168_v4 = vadd.f32 %v1492_v3, %v1337_v2  ;;  %v184_v5 = vpop.f32.mrb[1].mxu0 }
 0x141   :  { %v321_v6 = vpop.f32.mrb[0].mxu1  ;;  %v185_v23 = vadd.f32 %v1337_v2, %v184_v5 }
 0x142   :  { %v1536_v9 = vpop.f32.mrb[1].mxu1  ;;  %v322_v13 = vadd.f32 %v1338_v8, %v321_v6 }
 0x143   :  { %v1495_v7 = vpop.f32.mrb[2].mxu0 }
 0x144   :  { %v2173_v10 = vadd.f32 %v1495_v7, %v1337_v2  ;;  %v194_v11 = vpop.f32.mrb[3].mxu0  ;;  %v1339_v18 = vmul.f32 -1.442695, %v322_v13 }
 0x145   :  { %v2175_v12 = vadd.f32 %v1337_v2, %v194_v11 }
 0x146   :  { %1778 = vpow2.f32 %v1339_v18 }
 0x147   :  { %v1498_v14 = vpop.f32.mrb[4].mxu0 }
 0x148   :  { %v2177_v15 = vadd.f32 %v1498_v14, %v1337_v2  ;;  %v204_v16 = vpop.f32.mrb[5].mxu0 }
 0x149   :  { %v2179_v17 = vadd.f32 %v1337_v2, %v204_v16 }
 0x14b   :  { %v1501_v19 = vpop.f32.mrb[6].mxu0 }
 0x14c   :  { %v2181_v20 = vadd.f32 %v1501_v19, %v1337_v2  ;;  %v214_v21 = vpop.f32.mrb[7].mxu0 }
 0x14d   :  { %v2183_v22 = vadd.f32 %v1337_v2, %v214_v21 }
 0x14f   :  { %v505_v24 = vpop.f32.mrb[8].mxu0 }
 0x150   :  { %v509_v25 = vadd.f32 %v505_v24, %v185_v23  ;;  %v1558_v26 = vpop.f32.mrb[9].mxu0  ;;  %v1779_v28 = vpop.eup %1778 }
 0x151   :  { %v328_v29 = vadd.f32 1.0, %v1779_v28 }
 0x152   :  { %v1343_v27 = vmul.f32 -1.442695, %v509_v25 }
 0x154   :  { %1780 = vpow2.f32 %v1343_v27 }
 0x155   :  { %1782 = vrcp.f32 %v328_v29 }
 0x15e   :  { %v1781_v30 = vpop.eup %1780 }
 0x15f   :  { %v513_v31 = vadd.f32 1.0, %v1781_v30  ;;  %v1783_v32 = vpop.eup %1782 }
 0x160   :  { %v331_v35 = vmul.f32 2.0, %v1783_v32 }
 0x161   :  { %1784 = vrcp.f32 %v513_v31 }
 0x162   :  { %v1340_v37 = vadd.f32 -1.0, %v331_v35 }
 0x16b   :  { %v1785_v33 = vpop.eup %1784 }
 0x16c   :  { %v516_v34 = vmul.f32 2.0, %v1785_v33  ;;  %v518_v46 = vmul.f32 0.0, %v1785_v33 }
 0x16e   :  { %v1344_v36 = vadd.f32 -1.0, %v516_v34 }
 0x170   :  { %520 = vrot.lane.b32.xlu0 %v1344_v36, %s1935_s2 }
 0x174   :  { %334 = vrot.lane.b32.xlu0 %v1340_v37, %s1935_s2 }
 0x1e2   :  { %v521_v38 = vpop.permute.xlu0 %520 }
 0x1e3   :  { %v523_v39 = vmul.f32 %v1785_v33, %v521_v38 }
 0x1e5   :  { %525 = vrot.lane.b32.xlu1 %v523_v39, %s1936_s5 }
 0x1e6   :  { %v335_v40 = vpop.permute.xlu0 %334 }
 0x1e7   :  { %v337_v41 = vmul.f32 %v1783_v32, %v335_v40 }
 0x1e9   :  { %1786 = vtanh.f32 %v337_v41 }
 0x1f3   :  { %v1787_v45 = vpop.eup %1786 }
 0x1f4   :  { %340 = vrot.lane.b32.xlu1 %v1787_v45, %s1937_s16 }
 0x257   :  { %v526_v49 = vpop.permute.xlu1 %525 }
 0x258   :  { %v528_v51 = vadd.f32 %v526_v49, %v518_v46 }
 0x25a   :  { %1788 = vtanh.f32 %v528_v51 }
 0x264   :  { %v1789_v52 = vpop.eup %1788 }
 0x265   :  { %531 = vrot.lane.b32.xlu0 %v1789_v52, %s1935_s2 }
 0x266   :  { %v341_v53 = vpop.permute.xlu1 %340 }
 0x267   :  { %v343_v55 = vmul.f32 %v1783_v32, %v341_v53 }
 0x269   :  { %356 = vrot.lane.b32.xlu1 %v343_v55, %s1936_s5 }
 0x2d7   :  { %v532_v56 = vpop.permute.xlu0 %531 }
 0x2d8   :  { %v534_v57 = vmul.f32 %v1785_v33, %v532_v56 }
 0x2da   :  { %537 = vrot.lane.b32.xlu0 %v534_v57, %s1936_s5 }
 0x2db   :  { %v357_v58 = vpop.permute.xlu1 %356 }
 0x2dc   :  { %1546 = vmatmul.mubr.msk.f32.vlgmr.msra.gmra.mrb[2].mxu1 %vm358_vm1, %v357_v58 }
 0x2dd   :  { %1717 = vmatpush3.bf16.msra.mxu1 %v2125_v54  ;;  %1567 = vmatprep.mubr.msk.f32.mxu1 %vm1933_vm0, %v1934_v1 }
 0x2de   :  { %1718 = vmatprep.subr.bf16.mxu1 %v1932_v0 }
 0x2e1   :  { %1720 = vmatpush3.bf16.msra.mxu1 %v2136_v59 }
 0x2e2   :  { %1727 = vmatprep.subr.bf16.mxu1 %v1932_v0 }
 0x34c   :  { %v538_v60 = vpop.permute.xlu0 %537 }
 0x34d   :  { %1568 = vmatmul.mubr.msk.f32.vlgmr.msra.gmra.mrb[4].mxu1 %vm358_vm1, %v538_v60 }
 0x34e   :  { %1729 = vmatpush3.bf16.msra.mxu1 %v2125_v54  ;;  %1589 = vmatprep.mubr.msk.f32.mxu1 %vm1933_vm0, %v1934_v1 }
 0x34f   :  { %1730 = vmatprep.subr.bf16.mxu1 %v1932_v0 }
 0x352   :  { %1732 = vmatpush3.bf16.msra.mxu1 %v2136_v59 }
 0x353   :  { %1739 = vmatprep.subr.bf16.mxu1 %v1932_v0 }
 0x420   :  { %v607_v61 = vpop.f32.mrb[4].mxu1 }
 0x421   :  { %v611_v62 = vadd.f32 %v607_v61, %v2168_v4  ;;  %v1569_v63 = vpop.f32.mrb[5].mxu1 }
 0x423   :  { %v1346_v2 = vmul.f32 -1.442695, %v611_v62 }
 0x425   :  { %1790 = vpow2.f32 %v1346_v2 }
 0x42f   :  { %v1791_v3 = vpop.eup %1790 }
 0x430   :  { %v615_v5 = vadd.f32 1.0, %v1791_v3 }
 0x432   :  { %1792 = vrcp.f32 %v615_v5 }
 0x43c   :  { %v1793_v6 = vpop.eup %1792 }
 0x43d   :  { %v618_v7 = vmul.f32 2.0, %v1793_v6  ;;  %v620_v13 = vmul.f32 %v1793_v6, %v528_v51 }
 0x43f   :  { %v1347_v8 = vadd.f32 -1.0, %v618_v7 }
 0x441   :  { %622 = vrot.lane.b32.xlu1 %v1347_v8, %s1935_s2 }
 0x4b3   :  { %v623_v9 = vpop.permute.xlu1 %622 }
 0x4b4   :  { %v625_v11 = vmul.f32 %v1793_v6, %v623_v9 }
 0x4b6   :  { %627 = vrot.lane.b32.xlu0 %v625_v11, %s1936_s5 }
 0x528   :  { %v628_v14 = vpop.permute.xlu0 %627 }
 0x529   :  { %v630_v16 = vadd.f32 %v628_v14, %v620_v13 }
 0x52b   :  { %1794 = vtanh.f32 %v630_v16 }
 0x535   :  { %v1795_v4 = vpop.eup %1794 }
 0x536   :  { %633 = vrot.lane.b32.xlu1 %v1795_v4, %s1935_s2 }
 0x5a8   :  { %v634_v18 = vpop.permute.xlu1 %633 }
 0x5a9   :  { %v636_v19 = vmul.f32 %v1793_v6, %v634_v18 }
 0x5ab   :  { %639 = vrot.lane.b32.xlu0 %v636_v19, %s1936_s5 }
 0x61d   :  { %v640_v21 = vpop.permute.xlu0 %639 }
 0x61e   :  { %1579 = vmatmul.mubr.msk.f32.vlgmr.msra.gmra.mrb[10].mxu0 %vm358_vm1, %v640_v21 }
 0x61f   :  { %1735 = vmatpush3.bf16.msra.mxu0 %v2125_v54  ;;  %1600 = vmatprep.mubr.msk.f32.mxu0 %vm1933_vm0, %v1934_v1 }
 0x620   :  { %1736 = vmatprep.subr.bf16.mxu0 %v1932_v0 }
 0x623   :  { %1738 = vmatpush3.bf16.msra.mxu0 %v2136_v59 }
 0x624   :  { %1745 = vmatprep.subr.bf16.mxu0 %v1932_v0 }
 0x6f1   :  { %v709_v23 = vpop.f32.mrb[10].mxu0 }
 0x6f2   :  { %v713_v24 = vadd.f32 %v709_v23, %v2175_v12  ;;  %v1580_v25 = vpop.f32.mrb[11].mxu0 }
 0x6f4   :  { %v1349_v26 = vmul.f32 -1.442695, %v713_v24 }
 0x6f6   :  { %1796 = vpow2.f32 %v1349_v26 }
 0x700   :  { %v1797_v27 = vpop.eup %1796 }
 0x701   :  { %v717_v28 = vadd.f32 1.0, %v1797_v27 }
 0x703   :  { %1798 = vrcp.f32 %v717_v28 }
 0x70d   :  { %v1799_v29 = vpop.eup %1798 }
 0x70e   :  { %v720_v30 = vmul.f32 2.0, %v1799_v29  ;;  %v722_v34 = vmul.f32 %v1799_v29, %v630_v16 }
 0x710   :  { %v1350_v31 = vadd.f32 -1.0, %v720_v30 }
 0x712   :  { %724 = vrot.lane.b32.xlu1 %v1350_v31, %s1935_s2 }
 0x784   :  { %v725_v32 = vpop.permute.xlu1 %724 }
 0x785   :  { %v727_v33 = vmul.f32 %v1799_v29, %v725_v32 }
 0x787   :  { %729 = vrot.lane.b32.xlu0 %v727_v33, %s1936_s5 }
 0x7f9   :  { %v730_v35 = vpop.permute.xlu0 %729 }
 0x7fa   :  { %v732_v36 = vadd.f32 %v730_v35, %v722_v34 }
 0x7fc   :  { %1800 = vtanh.f32 %v732_v36 }
 0x806   :  { %v1801_v12 = vpop.eup %1800 }
 0x807   :  { %735 = vrot.lane.b32.xlu1 %v1801_v12, %s1935_s2 }
 0x879   :  { %v736_v37 = vpop.permute.xlu1 %735 }
 0x87a   :  { %v738_v38 = vmul.f32 %v1799_v29, %v736_v37 }
 0x87c   :  { %741 = vrot.lane.b32.xlu0 %v738_v38, %s1936_s5 }
 0x8ee   :  { %v742_v39 = vpop.permute.xlu0 %741 }
 0x8ef   :  { %1590 = vmatmul.mubr.msk.f32.vlgmr.msra.gmra.mrb[6].mxu1 %vm358_vm1, %v742_v39 }
 0x8f0   :  { %1741 = vmatpush3.bf16.msra.mxu1 %v2125_v54  ;;  %1611 = vmatprep.mubr.msk.f32.mxu1 %vm1933_vm0, %v1934_v1 }
 0x8f1   :  { %1742 = vmatprep.subr.bf16.mxu1 %v1932_v0 }
 0x8f4   :  { %1744 = vmatpush3.bf16.msra.mxu1 %v2136_v59 }
 0x8f5   :  { %1751 = vmatprep.subr.bf16.mxu1 %v1932_v0 }
 0x9c2   :  { %v811_v40 = vpop.f32.mrb[6].mxu1 }
 0x9c3   :  { %v815_v41 = vadd.f32 %v811_v40, %v2173_v10  ;;  %v1591_v42 = vpop.f32.mrb[7].mxu1 }
 0x9c5   :  { %v1352_v43 = vmul.f32 -1.442695, %v815_v41 }
 0x9c7   :  { %1802 = vpow2.f32 %v1352_v43 }
 0x9d1   :  { %v1803_v44 = vpop.eup %1802 }
 0x9d2   :  { %v819_v45 = vadd.f32 1.0, %v1803_v44 }
 0x9d4   :  { %1804 = vrcp.f32 %v819_v45 }
 0x9de   :  { %v1805_v46 = vpop.eup %1804 }
 0x9df   :  { %v822_v47 = vmul.f32 2.0, %v1805_v46  ;;  %v824_v51 = vmul.f32 %v1805_v46, %v732_v36 }
 0x9e1   :  { %v1353_v48 = vadd.f32 -1.0, %v822_v47 }
 0x9e3   :  { %826 = vrot.lane.b32.xlu1 %v1353_v48, %s1935_s2 }
 0xa55   :  { %v827_v49 = vpop.permute.xlu1 %826 }
 0xa56   :  { %v829_v50 = vmul.f32 %v1805_v46, %v827_v49 }
 0xa58   :  { %831 = vrot.lane.b32.xlu0 %v829_v50, %s1936_s5 }
 0xaca   :  { %v832_v52 = vpop.permute.xlu0 %831 }
 0xacb   :  { %v834_v53 = vadd.f32 %v832_v52, %v824_v51 }
 0xacd   :  { %1806 = vtanh.f32 %v834_v53 }
 0xad7   :  { %v1807_v10 = vpop.eup %1806 }
 0xad8   :  { %837 = vrot.lane.b32.xlu1 %v1807_v10, %s1935_s2 }
 0xb4a   :  { %v838_v55 = vpop.permute.xlu1 %837 }
 0xb4b   :  { %v840_v56 = vmul.f32 %v1805_v46, %v838_v55 }
 0xb4d   :  { %843 = vrot.lane.b32.xlu0 %v840_v56, %s1936_s5 }
 0xbbf   :  { %v844_v57 = vpop.permute.xlu0 %843 }
 0xbc0   :  { %1601 = vmatmul.mubr.msk.f32.vlgmr.msra.gmra.mrb[12].mxu0 %vm358_vm1, %v844_v57 }
 0xbc1   :  { %1747 = vmatpush3.bf16.msra.mxu0 %v2125_v54  ;;  %1622 = vmatprep.mubr.msk.f32.mxu0 %vm1933_vm0, %v1934_v1 }
 0xbc2   :  { %1748 = vmatprep.subr.bf16.mxu0 %v1932_v0 }
 0xbc5   :  { %1750 = vmatpush3.bf16.msra.mxu0 %v2136_v59 }
 0xc93   :  { %v913_v58 = vpop.f32.mrb[12].mxu0 }
 0xc94   :  { %v917_v60 = vadd.f32 %v913_v58, %v2179_v17  ;;  %v1602_v61 = vpop.f32.mrb[13].mxu0 }
 0xc96   :  { %v1355_v62 = vmul.f32 -1.442695, %v917_v60 }
 0xc98   :  { %1808 = vpow2.f32 %v1355_v62 }
 0xca2   :  { %v1809_v63 = vpop.eup %1808 }
 0xca3   :  { %v921_v2 = vadd.f32 1.0, %v1809_v63 }
 0xca5   :  { %1810 = vrcp.f32 %v921_v2 }
 0xcaf   :  { %v1811_v3 = vpop.eup %1810 }
 0xcb0   :  { %v924_v5 = vmul.f32 2.0, %v1811_v3  ;;  %v926_v9 = vmul.f32 %v1811_v3, %v834_v53 }
 0xcb2   :  { %v1356_v6 = vadd.f32 -1.0, %v924_v5  ;;  %v1251_v5 = vld [vmem:[#allocation7 + $0x10] sm:$0xff] }
 0xcb4   :  { %928 = vrot.lane.b32.xlu1 %v1356_v6, %s1935_s2 }
 0xd26   :  { %v929_v7 = vpop.permute.xlu1 %928 }
 0xd27   :  { %v931_v8 = vmul.f32 %v1811_v3, %v929_v7  ;;  %v1252_v7 = vld [vmem:[#allocation7 + $0x18] sm:$0xff] }
 0xd29   :  { %933 = vrot.lane.b32.xlu0 %v931_v8, %s1936_s5  ;;  %v1761_v8 = vpack.c.bf16 %v1252_v7, %v1251_v5 }
 0xd9b   :  { %v934_v11 = vpop.permute.xlu0 %933 }
 0xd9c   :  { %v936_v13 = vadd.f32 %v934_v11, %v926_v9 }
 0xd9e   :  { %1812 = vtanh.f32 %v936_v13 }
 0xda8   :  { %v1813_v17 = vpop.eup %1812 }
 0xda9   :  { %939 = vrot.lane.b32.xlu1 %v1813_v17, %s1935_s2 }
 0xe1b   :  { %v940_v14 = vpop.permute.xlu1 %939 }
 0xe1c   :  { %v942_v16 = vmul.f32 %v1811_v3, %v940_v14  ;;  %v1250_v3 = vld [vmem:[#allocation7 + $0x8] sm:$0xff]  ;;  %v1341_v14 = vld [vmem:[%s2289_s8] ss:$0 sm:$0xff] }
 0xe1e   :  { %945 = vrot.lane.b32.xlu0 %v942_v16, %s1936_s5 }
 0xe90   :  { %v946_v4 = vpop.permute.xlu0 %945 }
 0xe91   :  { %1612 = vmatmul.mubr.msk.f32.vlgmr.msra.gmra.mrb[8].mxu1 %vm358_vm1, %v946_v4 }
 0xe92   :  { %1753 = vmatpush3.bf16.msra.mxu1 %v2125_v54  ;;  %1633 = vmatprep.mubr.msk.f32.mxu1 %vm1933_vm0, %v1934_v1 }
 0xe93   :  { %1754 = vmatprep.subr.bf16.mxu1 %v1932_v0 }
 0xe96   :  { %1756 = vmatpush3.bf16.msra.mxu1 %v2136_v59 }
 0xe97   :  { %1757 = vmatprep.subr.bf16.mxu1 %v1932_v0 }
 0xf64   :  { %v1015_v18 = vpop.f32.mrb[8].mxu1 }
 0xf65   :  { %v1019_v19 = vadd.f32 %v1015_v18, %v2177_v15  ;;  %v1613_v21 = vpop.f32.mrb[9].mxu1 }
 0xf67   :  { %v1358_v23 = vmul.f32 -1.442695, %v1019_v19 }
 0xf69   :  { %1814 = vpow2.f32 %v1358_v23 }
 0xf73   :  { %v1815_v24 = vpop.eup %1814 }
 0xf74   :  { %v1023_v25 = vadd.f32 1.0, %v1815_v24 }
 0xf76   :  { %1816 = vrcp.f32 %v1023_v25 }
 0xf80   :  { %v1817_v26 = vpop.eup %1816 }
 0xf81   :  { %v1026_v54 = vmul.f32 2.0, %v1817_v26  ;;  %v1028_v59 = vmul.f32 %v1817_v26, %v936_v13 }
 0xf83   :  { %v1359_v27 = vadd.f32 -1.0, %v1026_v54 }
 0xf85   :  { %1030 = vrot.lane.b32.xlu1 %v1359_v27, %s1935_s2 }
 0xff7   :  { %v1031_v28 = vpop.permute.xlu1 %1030 }
 0xff8   :  { %v1033_v29 = vmul.f32 %v1817_v26, %v1031_v28 }
 0xffa   :  { %1035 = vrot.lane.b32.xlu0 %v1033_v29, %s1936_s5 }
0x106c   :  { %v1036_v30 = vpop.permute.xlu0 %1035 }
0x106d   :  { %v1038_v31 = vadd.f32 %v1036_v30, %v1028_v59 }
0x106f   :  { %1818 = vtanh.f32 %v1038_v31 }
0x1079   :  { %v1819_v15 = vpop.eup %1818 }
0x107a   :  { %1041 = vrot.lane.b32.xlu1 %v1819_v15, %s1935_s2 }
0x10ec   :  { %v1042_v32 = vpop.permute.xlu1 %1041 }
0x10ed   :  { %v1044_v33 = vmul.f32 %v1817_v26, %v1042_v32 }
0x10ef   :  { %1047 = vrot.lane.b32.xlu0 %v1044_v33, %s1936_s5 }
0x1161   :  { %v1048_v34 = vpop.permute.xlu0 %1047 }
0x1162   :  { %1623 = vmatmul.mubr.msk.f32.vlgmr.msra.gmra.mrb[14].mxu0 %vm358_vm1, %v1048_v34 }
0x1235   :  { %v1117_v35 = vpop.f32.mrb[14].mxu0 }
0x1236   :  { %v1121_v36 = vadd.f32 %v1117_v35, %v2183_v22  ;;  %v1624_v12 = vpop.f32.mrb[15].mxu0 }
0x1238   :  { %v1361_v37 = vmul.f32 -1.442695, %v1121_v36 }
0x123a   :  { %1820 = vpow2.f32 %v1361_v37 }
0x1244   :  { %v1821_v38 = vpop.eup %1820 }
0x1245   :  { %v1125_v39 = vadd.f32 1.0, %v1821_v38 }
0x1247   :  { %1822 = vrcp.f32 %v1125_v39 }
0x1251   :  { %v1823_v40 = vpop.eup %1822 }
0x1252   :  { %v1128_v41 = vmul.f32 2.0, %v1823_v40  ;;  %v1130_v45 = vmul.f32 %v1823_v40, %v1038_v31 }
0x1254   :  { %v1362_v42 = vadd.f32 -1.0, %v1128_v41 }
0x1256   :  { %1132 = vrot.lane.b32.xlu1 %v1362_v42, %s1935_s2 }
0x12c8   :  { %v1133_v43 = vpop.permute.xlu1 %1132 }
0x12c9   :  { %v1135_v44 = vmul.f32 %v1823_v40, %v1133_v43 }
0x12cb   :  { %1137 = vrot.lane.b32.xlu0 %v1135_v44, %s1936_s5 }
0x133d   :  { %v1138_v46 = vpop.permute.xlu0 %1137 }
0x133e   :  { %v1140_v47 = vadd.f32 %v1138_v46, %v1130_v45 }
0x1340   :  { %1824 = vtanh.f32 %v1140_v47 }
0x134a   :  { %v1825_v22 = vpop.eup %1824 }
0x134b   :  { %1143 = vrot.lane.b32.xlu1 %v1825_v22, %s1935_s2 }
0x13bd   :  { %v1144_v48 = vpop.permute.xlu1 %1143 }
0x13be   :  { %v1146_v49 = vmul.f32 %v1823_v40, %v1144_v48 }
0x13c0   :  { %1149 = vrot.lane.b32.xlu0 %v1146_v49, %s1936_s5 }
0x1432   :  { %v1150_v50 = vpop.permute.xlu0 %1149 }
0x1433   :  { %1634 = vmatmul.mubr.msk.f32.vlgmr.msra.gmra.mrb[10].mxu1 %vm358_vm1, %v1150_v50 }
0x1434   :  { %1644 = vmatprep.mubr.msk.f32.mxu1 %vm1933_vm0, %v1934_v1 }
0x1506   :  { %v1219_v51 = vpop.f32.mrb[10].mxu1 }
0x1507   :  { %v1223_v52 = vadd.f32 %v1219_v51, %v2181_v20  ;;  %v1635_v53 = vpop.f32.mrb[11].mxu1  ;;  %v1249_v20 = vld [vmem:[#allocation7] sm:$0xff] }
0x1508   :  { %v1758_v6 = vpack.c.bf16 %v1250_v3, %v1249_v20 }
0x1509   :  { %v1364_v10 = vmul.f32 -1.442695, %v1223_v52 }
0x150a   :  { %1759 = vmatpush3.bf16.msra.mxu1 %v1758_v6 }
0x150b   :  { %1826 = vpow2.f32 %v1364_v10  ;;  %1760 = vmatprep.subr.bf16.mxu1 %v1932_v0 }
0x150e   :  { %1762 = vmatpush3.bf16.msra.mxu1 %v1761_v8 }
0x1515   :  { %v1827_v55 = vpop.eup %1826 }
0x1516   :  { %v1227_v56 = vadd.f32 1.0, %v1827_v55 }
0x1518   :  { %1828 = vrcp.f32 %v1227_v56 }
0x1522   :  { %v1829_v57 = vpop.eup %1828 }
0x1523   :  { %v1230_v58 = vmul.f32 2.0, %v1829_v57  ;;  %v1232_v63 = vmul.f32 %v1829_v57, %v1140_v47 }
0x1525   :  { %v1365_v60 = vadd.f32 -1.0, %v1230_v58 }
0x1527   :  { %1234 = vrot.lane.b32.xlu1 %v1365_v60, %s1935_s2 }
0x1599   :  { %v1235_v61 = vpop.permute.xlu1 %1234 }
0x159a   :  { %v1237_v62 = vmul.f32 %v1829_v57, %v1235_v61 }
0x159c   :  { %1239 = vrot.lane.b32.xlu0 %v1237_v62, %s1936_s5 }
0x160e   :  { %v1240_v1 = vpop.permute.xlu0 %1239 }
0x160f   :  { %v1242_v2 = vadd.f32 %v1240_v1, %v1232_v63 }
0x1611   :  { %1830 = vtanh.f32 %v1242_v2 }
0x161b   :  { %v1831_v9 = vpop.eup %1830 }
0x161c   :  { %1245 = vrot.lane.b32.xlu1 %v1831_v9, %s1935_s2 }
0x168e   :  { %v1246_v11 = vpop.permute.xlu1 %1245 }
0x168f   :  { %v1248_v13 = vmul.f32 %v1829_v57, %v1246_v11 }
0x1691   :  { %1254 = vrot.lane.b32.xlu0 %v1248_v13, %s1936_s5 }
0x1703   :  { %v1255_v17 = vpop.permute.xlu0 %1254 }
0x1704   :  { %1645 = vmatmul.mubr.msk.f32.vlgmr.msra.gmra.mrb[2].mxu1 %vm358_vm1, %v1255_v17 }
0x17d7   :  { %v1324_v16 = vpop.f32.mrb[2].mxu1 }
0x17d8   :  { %v1763_v4 = vadd.f32 %v1341_v14, %v1324_v16  ;;  %v1646_v18 = vpop.f32.mrb[3].mxu1 }
0x17da   :  { %1329 = vst [vmem:[%s2290_s9] sm:$0xff] %v1763_v4 }
0x17db   :  { %1334 = vsyncpa [#allocation4], 1 }
0x17dc   :  { %1335 = vsyncpa [#allocation6], 1 }
0x17dd   :  { %1336 = vsyncpa [#allocation9], 1 }

</bundles_post_ra>
